<compile_context>
chip_gen: v7x
topology: tpu7x:2x2x1
jax: 0.10.0
libtpu: 0.0.40
codegen_flags: <defaults>
</compile_context>

<pallas_src>
import math
from functools import partial

import jax
import jax.numpy as jnp
from jax.experimental import pallas as pl
from jax.experimental.pallas import tpu as pltpu


_LANE = 128
_SUBLANE = 8
_TARGET_TILE_BYTES = 4 << 20      # ~4 MiB of input per grid step
_MAX_PACK_WIDTH = 1024            # cap on lane-packed width
_VMEM_LIMIT_BYTES = 48 << 20      # explicit scoped-VMEM limit (safe on v5e/v6e/v7x)


# ----------------------------------------------------------------------------
# Helpers
# ----------------------------------------------------------------------------
def _lane_pack_factor(size, n_rows):
    """How many (n, size) rows to pack side-by-side so lanes are dense."""
    if size % _LANE == 0:
        return 1
    k = _LANE // math.gcd(size, _LANE)          # lcm(size, 128) // size
    if k * size > _MAX_PACK_WIDTH:
        k = max(1, _LANE // size) if size < _LANE else 1
    if n_rows > 0 and n_rows % k != 0:
        k = math.gcd(k, n_rows)                 # packing needs k | n_rows
    return max(1, k)


def _choose_tile_rows(n_rows, width, itemsize, target_bytes):
    """Row-tile size: ~target_bytes per input block, dtype-native sublane multiple."""
    sub = _SUBLANE * max(1, 4 // max(1, itemsize))   # 8 f32, 16 bf16, 32 int8
    rows = target_bytes // max(1, width * itemsize)
    rows = max(sub, (rows // sub) * sub)
    if rows >= n_rows:
        return max(1, int(n_rows))                   # single full-extent block
    return int(rows)


def _std_with_eps(e_data, e_data_sq, eps):
    # Clamp variance >= 0 (f32 cancellation guard) but keep the original
    # nan_to_num / eps-floor semantics of the PyTorch module.
    var = jnp.maximum(e_data_sq - e_data * e_data, 0.0)
    return jnp.maximum(jnp.nan_to_num(jnp.sqrt(var)), eps)


# ----------------------------------------------------------------------------
# Kernel 1: column-wise sum and sum-of-squares over rows (for _accumulate)
# ----------------------------------------------------------------------------
def _column_sums(xp, rows, w, size, k, tile_rows):
    """xp: (rows, w) packed view. Returns ((size,), (size,)) f32 sums."""
    n_tiles = pl.cdiv(rows, tile_rows)
    num_partials = 2 if n_tiles >= 2 else 1          # use both TCs on v7x
    tiles_per_partial = -(-n_tiles // num_partials)
    total_tiles = num_partials * tiles_per_partial

    if total_tiles == n_tiles:
        x_index_map = lambda c, i: (c * tiles_per_partial + i, 0)
    else:
        last = n_tiles - 1                           # clamp phantom tiles in-bounds
        x_index_map = lambda c, i: (jnp.minimum(c * tiles_per_partial + i, last), 0)

    def accum_kernel(x_ref, sum_ref, sumsq_ref):
        c = pl.program_id(0)
        i = pl.program_id(1)

        @pl.when(i == 0)
        def _():
            sum_ref[...] = jnp.zeros_like(sum_ref)
            sumsq_ref[...] = jnp.zeros_like(sumsq_ref)

        tr, ww = x_ref.shape

        def reduce8(xv):
            # (m, ww) with m % 8 == 0 -> 8-sublane-resident partial sums (VPU adds).
            xr = xv.reshape(xv.shape[0] // _SUBLANE, _SUBLANE, ww)
            return jnp.sum(xr, axis=0), jnp.sum(xr * xr, axis=0)

        aligned = (tr % _SUBLANE == 0)
        exact = (rows % tile_rows == 0) and (total_tiles == n_tiles)

        if aligned and exact:
            # Every tile is full and real: no masking at all.
            s, s2 = reduce8(x_ref[...].astype(jnp.float32))
            sum_ref[...] += s
            sumsq_ref[...] += s2
        elif aligned:
            start = (c * tiles_per_partial + i) * tile_rows
            valid = rows - start                      # traced int32

            @pl.when(valid >= tr)                     # full tile: unmasked fast path
            def _():
                s, s2 = reduce8(x_ref[...].astype(jnp.float32))
                sum_ref[...] += s
                sumsq_ref[...] += s2

            @pl.when(jnp.logical_and(valid > 0, valid < tr))   # ragged last tile
            def _():
                x = x_ref[...].astype(jnp.float32)
                rid = jax.lax.broadcasted_iota(jnp.int32, (tr, ww), 0)
                x = jnp.where(rid < valid, x, 0.0)
                s, s2 = reduce8(x)
                sum_ref[...] += s
                sumsq_ref[...] += s2
            # valid <= 0 (clamped phantom tile): nothing accumulated.
        else:
            # Single full-extent block whose row count is not a sublane multiple
            # (only happens for small inputs; all rows are valid, no masking).
            x = x_ref[...].astype(jnp.float32)
            main = (tr // _SUBLANE) * _SUBLANE
            xt = x[main:]
            t = jnp.sum(xt, axis=0, keepdims=True)
            t2 = jnp.sum(xt * xt, axis=0, keepdims=True)
            row0 = jax.lax.broadcasted_iota(jnp.int32, (_SUBLANE, ww), 0) == 0
            s = jnp.where(row0, jnp.broadcast_to(t, (_SUBLANE, ww)), 0.0)
            s2 = jnp.where(row0, jnp.broadcast_to(t2, (_SUBLANE, ww)), 0.0)
            if main > 0:
                sm, sm2 = reduce8(x[:main])
                s = s + sm
                s2 = s2 + sm2
            sum_ref[...] += s
            sumsq_ref[...] += s2

    sums, sumsqs = pl.pallas_call(
        accum_kernel,
        out_shape=(jax.ShapeDtypeStruct((num_partials * _SUBLANE, w), jnp.float32),
                   jax.ShapeDtypeStruct((num_partials * _SUBLANE, w), jnp.float32)),
        grid_spec=pltpu.PrefetchScalarGridSpec(
            num_scalar_prefetch=0,
            grid=(num_partials, tiles_per_partial),
            in_specs=[pl.BlockSpec((tile_rows, w), x_index_map)],
            out_specs=(pl.BlockSpec((_SUBLANE, w), lambda c, i: (c, 0)),
                       pl.BlockSpec((_SUBLANE, w), lambda c, i: (c, 0)))),
        compiler_params=pltpu.CompilerParams(
            dimension_semantics=("parallel", "arbitrary"),
            vmem_limit_bytes=_VMEM_LIMIT_BYTES),
    )(xp)

    col_sum = sums.reshape(num_partials * _SUBLANE, k, size).sum(axis=(0, 1))
    col_sumsq = sumsqs.reshape(num_partials * _SUBLANE, k, size).sum(axis=(0, 1))
    return col_sum, col_sumsq


@partial(jax.jit, static_argnames=("size", "unit", "target_bytes"))
def _accumulate_impl(x2d, e_data, e_data_sq, acc_weight, size, unit,
                     target_bytes=_TARGET_TILE_BYTES):
    n = x2d.shape[0]
    k = _lane_pack_factor(size, n)
    rows, w = n // k, k * size
    xp = x2d.reshape(rows, w)                         # free reshape, no pad
    tile_rows = _choose_tile_rows(rows, w, x2d.dtype.itemsize, target_bytes)

    col_sum, col_sumsq = _column_sums(xp, rows, w, size, k, tile_rows)

    delta_weight = jnp.float32(n / unit)
    new_weight = acc_weight + delta_weight
    new_e = (e_data * acc_weight + (col_sum / n) * delta_weight) / new_weight
    new_e2 = (e_data_sq * acc_weight + (col_sumsq / n) * delta_weight) / new_weight
    return new_e, new_e2, new_weight


# ----------------------------------------------------------------------------
# Kernel 2: normalization  o = x * inv_std + (-mean * inv_std)
# ----------------------------------------------------------------------------
def _normalize_kernel(x_ref, stat_ref, o_ref):
    x = x_ref[...].astype(jnp.float32)
    tr, w = x.shape
    if tr % _SUBLANE == 0:
        inv = stat_ref[0:_SUBLANE, :]                 # (8, w) pre-broadcast
        off = stat_ref[_SUBLANE:2 * _SUBLANE, :]      # (8, w)
        xr = x.reshape(tr // _SUBLANE, _SUBLANE, w)
        o_ref[...] = (xr * inv[None, :, :] + off[None, :, :]).reshape(tr, w)
    else:
        inv = stat_ref[0:1, :]
        off = stat_ref[_SUBLANE:_SUBLANE + 1, :]
        o_ref[...] = x * inv + off


@partial(jax.jit, static_argnames=("size", "target_bytes"))
def _normalize_impl(x2d, e_data, e_data_sq, std_eps, size,
                    target_bytes=_TARGET_TILE_BYTES):
    n = x2d.shape[0]
    k = _lane_pack_factor(size, n)
    rows, w = n // k, k * size
    xp = x2d.reshape(rows, w)                         # free reshape, no pad

    # Hoisted statistics math (sqrt / reciprocal / nan handling) out of the kernel.
    inv_std = (1.0 / _std_with_eps(e_data, e_data_sq, std_eps)).astype(jnp.float32)
    offset = (-e_data.astype(jnp.float32) * inv_std)
    stats = jnp.concatenate(
        [jnp.tile(inv_std.reshape(1, size), (_SUBLANE, k)),
         jnp.tile(offset.reshape(1, size), (_SUBLANE, k))], axis=0)   # (16, w)

    tile_rows = _choose_tile_rows(rows, w, x2d.dtype.itemsize, target_bytes)
    grid = (pl.cdiv(rows, tile_rows),)                # ragged last block handled
                                                      # by Pallas boundary clipping
    out = pl.pallas_call(
        _normalize_kernel,
        out_shape=jax.ShapeDtypeStruct((rows, w), jnp.float32),
        grid_spec=pltpu.PrefetchScalarGridSpec(
            num_scalar_prefetch=0,
            grid=grid,
            in_specs=[pl.BlockSpec((tile_rows, w), lambda i: (i, 0)),
                      pl.BlockSpec((2 * _SUBLANE, w), lambda i: (0, 0))],
            out_specs=pl.BlockSpec((tile_rows, w), lambda i: (i, 0))),
        compiler_params=pltpu.CompilerParams(
            dimension_semantics=("parallel",),        # independent tiles (both TCs on v7x)
            vmem_limit_bytes=_VMEM_LIMIT_BYTES),
    )(xp, stats)

    return out.reshape(n, size)                       # exact shape: no trailing slice


# ----------------------------------------------------------------------------
# Python-side state container mirroring the nn.Module (glue only; the row
# reduction and the elementwise normalization run in Pallas).
# ----------------------------------------------------------------------------
class Normalizer:
    def __init__(self, size, max_accumulations=10 ** 6, std_epsilon=1e-8,
                 unit=10 ** 6, name='Normalizer', tile_bytes=_TARGET_TILE_BYTES):
        self.name = name
        self.size = size
        self.unit = unit
        self.tile_bytes = int(tile_bytes)
        self._max_accumulations = float(max_accumulations)
        self.std_eps = jnp.float32(std_epsilon)
        self._acc_weight = jnp.zeros((), jnp.float32)
        # Host-side counter: avoids a device->host sync on every __call__.
        self._num_accumulations = 0
        self._E_data = jnp.zeros((size,), jnp.float32)
        self._E_data_squared = jnp.zeros((size,), jnp.float32)

    def _accumulate(self, x2d):
        self._E_data, self._E_data_squared, self._acc_weight = _accumulate_impl(
            x2d, self._E_data, self._E_data_squared, self._acc_weight,
            size=self.size, unit=self.unit, target_bytes=self.tile_bytes)
        self._num_accumulations += 1

    def mean(self):
        return self._E_data

    def std_with_epsilon(self):
        return _std_with_eps(self._E_data, self._E_data_squared, self.std_eps)

    def inverse(self, normalized_batch_data):
        return (normalized_batch_data * self.std_with_epsilon()
                + self.mean()).astype(jnp.float32)

    def __call__(self, batched_data, accumulate=False):
        x2d = batched_data.reshape(-1, self.size)
        if accumulate and self._num_accumulations < self._max_accumulations:
            self._accumulate(x2d)
        out = _normalize_impl(x2d, self._E_data, self._E_data_squared,
                              self.std_eps, size=self.size,
                              target_bytes=self.tile_bytes)
        return out.reshape(batched_data.shape)

    forward = __call__


if __name__ == "__main__":
    # --- Test 1: small feature width (32) exercises lane packing (k=4 -> 128). ---
    key = jax.random.PRNGKey(0)
    B, S, SIZE = 2, 8, 32
    x = jax.random.normal(key, (B, S, SIZE), dtype=jnp.float32) * 3.0 + 1.5

    norm = Normalizer(size=SIZE, name="t1")
    y = jax.block_until_ready(norm(x, accumulate=True))     # accumulate + normalize
    y2 = jax.block_until_ready(norm(x, accumulate=False))   # pure normalize

    mean_ref = norm.mean()
    std_ref = norm.std_with_epsilon()
    ref = ((x.reshape(-1, SIZE) - mean_ref) / std_ref).reshape(x.shape).astype(jnp.float32)

    assert y.shape == x.shape and y.dtype == jnp.float32
    assert jnp.allclose(y, ref, atol=1e-4, rtol=1e-4)
    assert jnp.allclose(y2, ref, atol=1e-4, rtol=1e-4)

    x2d = x.reshape(-1, SIZE)
    assert jnp.allclose(norm.mean(), jnp.mean(x2d, axis=0), atol=1e-4, rtol=1e-4)
    assert jnp.allclose(norm._E_data_squared, jnp.mean(x2d ** 2, axis=0),
                        atol=1e-4, rtol=1e-4)

    # --- Test 2: bf16 input, size=160 lane-packs to 640, odd packed-row count. ---
    SIZE2 = 160
    xb = (jax.random.normal(jax.random.PRNGKey(1), (2000, SIZE2), jnp.float32)
          * 0.5 + 2.0).astype(jnp.bfloat16)
    norm2 = Normalizer(size=SIZE2, name="t2")
    yb = jax.block_until_ready(norm2(xb, accumulate=True))

    xf = xb.astype(jnp.float32)
    ref_mean = jnp.mean(xf, axis=0)
    ref_e2 = jnp.mean(xf ** 2, axis=0)
    ref_std = jnp.maximum(
        jnp.nan_to_num(jnp.sqrt(jnp.maximum(ref_e2 - ref_mean ** 2, 0.0))), norm2.std_eps)
    ref_b = (xf - ref_mean) / ref_std
    assert yb.shape == xb.shape and yb.dtype == jnp.float32
    assert jnp.allclose(norm2.mean(), ref_mean, atol=1e-2, rtol=1e-2)
    assert jnp.allclose(yb, ref_b, atol=1e-2, rtol=1e-2)

    # --- Test 3: small forced tile exercises the multi-tile pipeline, the ragged
    #     masked tail, the 2-way partial split and the clamped phantom tile. ---
    SIZE3 = 128
    x3 = jax.random.normal(jax.random.PRNGKey(2), (1100, SIZE3), jnp.float32) * 2.0 - 0.5
    norm3 = Normalizer(size=SIZE3, name="t3", tile_bytes=64 * 1024)
    y3 = jax.block_until_ready(norm3(x3, accumulate=True))

    ref3_mean = jnp.mean(x3, axis=0)
    ref3_e2 = jnp.mean(x3 ** 2, axis=0)
    ref3_std = jnp.maximum(
        jnp.nan_to_num(jnp.sqrt(jnp.maximum(ref3_e2 - ref3_mean ** 2, 0.0))), norm3.std_eps)
    ref3 = (x3 - ref3_mean) / ref3_std
    assert y3.shape == x3.shape and y3.dtype == jnp.float32
    assert jnp.allclose(norm3.mean(), ref3_mean, atol=1e-3, rtol=1e-3)
    assert jnp.allclose(norm3._E_data_squared, ref3_e2, atol=1e-3, rtol=1e-3)
    assert jnp.allclose(y3, ref3, atol=1e-3, rtol=1e-3)

    print("KERNEL_OK")
</pallas_src>

<mosaic_0001>
module attributes {stable_mosaic.version = 11 : i64} {
  func.func @accum_kernel(%arg0: i32, %arg1: i32, %arg2: memref<4x128xf32, #tpu.memory_space<vmem>>, %arg3: memref<8x128xf32, #tpu.memory_space<vmem>>, %arg4: memref<8x128xf32, #tpu.memory_space<vmem>>) attributes {dimension_semantics = [#tpu.dimension_semantics<parallel>, #tpu.dimension_semantics<arbitrary>], iteration_bounds = array<i64: 1, 1>, scalar_prefetch = 0 : i64, scratch_operands = 0 : i64, tpu.core_type = #tpu.core_type<tc>, window_params = [{transform_indices = @transform_0, window_bounds = array<i64: 4, 128>}, {transform_indices = @transform_1, window_bounds = array<i64: 8, 128>}, {transform_indices = @transform_2, window_bounds = array<i64: 8, 128>}]} {
    %c0_i32 = arith.constant 0 : i32
    %0 = arith.cmpi eq, %arg1, %c0_i32 : i32
    %1 = arith.extui %0 : i1 to i32
    %c0_i32_0 = arith.constant 0 : i32
    %2 = arith.cmpi ne, %1, %c0_i32_0 : i32
    scf.if %2 {
      %cst_14 = arith.constant 0.000000e+00 : f32
      %26 = vector.broadcast %cst_14 : f32 to vector<8x128xf32>
      %c0_15 = arith.constant 0 : index
      %c0_16 = arith.constant 0 : index
      %27 = vector.load %arg3[%c0_15, %c0_16] : memref<8x128xf32, #tpu.memory_space<vmem>>, vector<8x128xf32>
      tpu.vector_store %arg3[%c0_15, %c0_16], %26 {strides = array<i32>} : memref<8x128xf32, #tpu.memory_space<vmem>>, vector<8x128xf32>,
      %cst_17 = arith.constant 0.000000e+00 : f32
      %28 = vector.broadcast %cst_17 : f32 to vector<8x128xf32>
      %c0_18 = arith.constant 0 : index
      %c0_19 = arith.constant 0 : index
      %29 = vector.load %arg4[%c0_18, %c0_19] : memref<8x128xf32, #tpu.memory_space<vmem>>, vector<8x128xf32>
      tpu.vector_store %arg4[%c0_18, %c0_19], %28 {strides = array<i32>} : memref<8x128xf32, #tpu.memory_space<vmem>>, vector<8x128xf32>,
    } else {
    }
    %c0 = arith.constant 0 : index
    %c0_1 = arith.constant 0 : index
    %3 = vector.load %arg2[%c0, %c0_1] : memref<4x128xf32, #tpu.memory_space<vmem>>, vector<4x128xf32>
    %cst = arith.constant dense<0.000000e+00> : vector<128xf32>
    %4 = vector.multi_reduction <add>, %3, %cst [0] : vector<4x128xf32> to vector<128xf32>
    %5 = vector.shape_cast %4 : vector<128xf32> to vector<1x128xf32>
    %6 = arith.mulf %3, %3 : vector<4x128xf32>
    %cst_2 = arith.constant dense<0.000000e+00> : vector<128xf32>
    %7 = vector.multi_reduction <add>, %6, %cst_2 [0] : vector<4x128xf32> to vector<128xf32>
    %8 = vector.shape_cast %7 : vector<128xf32> to vector<1x128xf32>
    %9 = tpu.iota {dimensions = array<i32: 0>} : vector<8x128xi32>
    %c0_i32_3 = arith.constant 0 : i32
    %10 = vector.broadcast %c0_i32_3 : i32 to vector<8x128xi32>
    %11 = arith.cmpi eq, %9, %10 : vector<8x128xi32>
    %12 = vector.shape_cast %5 : vector<1x128xf32> to vector<1x128xf32>
    %13 = vector.broadcast %12 : vector<1x128xf32> to vector<8x128xf32>
    %cst_4 = arith.constant 0.000000e+00 : f32
    %14 = vector.broadcast %cst_4 : f32 to vector<8x128xf32>
    %15 = arith.select %11, %13, %14 : vector<8x128xi1>, vector<8x128xf32>
    %16 = vector.shape_cast %8 : vector<1x128xf32> to vector<1x128xf32>
    %17 = vector.broadcast %16 : vector<1x128xf32> to vector<8x128xf32>
    %cst_5 = arith.constant 0.000000e+00 : f32
    %18 = vector.broadcast %cst_5 : f32 to vector<8x128xf32>
    %19 = arith.select %11, %17, %18 : vector<8x128xi1>, vector<8x128xf32>
    %c0_6 = arith.constant 0 : index
    %c0_7 = arith.constant 0 : index
    %20 = vector.load %arg3[%c0_6, %c0_7] : memref<8x128xf32, #tpu.memory_space<vmem>>, vector<8x128xf32>
    %21 = arith.addf %20, %15 : vector<8x128xf32>
    %c0_8 = arith.constant 0 : index
    %c0_9 = arith.constant 0 : index
    %22 = vector.load %arg3[%c0_8, %c0_9] : memref<8x128xf32, #tpu.memory_space<vmem>>, vector<8x128xf32>
    tpu.vector_store %arg3[%c0_8, %c0_9], %21 {strides = array<i32>} : memref<8x128xf32, #tpu.memory_space<vmem>>, vector<8x128xf32>,
    %c0_10 = arith.constant 0 : index
    %c0_11 = arith.constant 0 : index
    %23 = vector.load %arg4[%c0_10, %c0_11] : memref<8x128xf32, #tpu.memory_space<vmem>>, vector<8x128xf32>
    %24 = arith.addf %23, %19 : vector<8x128xf32>
    %c0_12 = arith.constant 0 : index
    %c0_13 = arith.constant 0 : index
    %25 = vector.load %arg4[%c0_12, %c0_13] : memref<8x128xf32, #tpu.memory_space<vmem>>, vector<8x128xf32>
    tpu.vector_store %arg4[%c0_12, %c0_13], %24 {strides = array<i32>} : memref<8x128xf32, #tpu.memory_space<vmem>>, vector<8x128xf32>,
    return
  }
  func.func @transform_0(%arg0: i32, %arg1: i32) -> (i32, i32) {
    %c1_i32 = arith.constant 1 : i32
    %0 = arith.muli %arg0, %c1_i32 : i32
    %1 = arith.addi %0, %arg1 : i32
    %c0_i32 = arith.constant 0 : i32
    %c0_i32_0 = arith.constant 0 : i32
    return %1, %c0_i32 : i32, i32
  }
  func.func @transform_1(%arg0: i32, %arg1: i32) -> (i32, i32) {
    %c0_i32 = arith.constant 0 : i32
    %c0_i32_0 = arith.constant 0 : i32
    return %arg0, %c0_i32 : i32, i32
  }
  func.func @transform_2(%arg0: i32, %arg1: i32) -> (i32, i32) {
    %c0_i32 = arith.constant 0 : i32
    %c0_i32_0 = arith.constant 0 : i32
    return %arg0, %c0_i32 : i32, i32
  }
}

</mosaic_0001>

<bundles_post_ra>
// kernel: _accumulate_impl.1
= control target key start
LH: loop header
LB: loop body
LE: loop exit
PB: predicated region body
PF: predicated region fallthrough
CT: control target
= control target key end

     0   :  { %vm34_vm0 = vcmask 1043456   ;;  %v50_v4 = vlaneseq  ;;  %s100_s0 = inlined_call_operand.vmem [shape: f32[4,128], index: 0, kind: input, shape index: {}]   ;;  %s101_s1 = inlined_call_operand.vmem [shape: f32[8,128], index: 1, kind: output, shape index: {0}]   ;;  %s102_s2 = inlined_call_operand.vmem [shape: f32[8,128], index: 2, kind: output, shape index: {1}]  }
   0x1   :  { %v33_v0 = vld [vmem:[%s100_s0] sm:$0xf] }
   0x2   :  { %v35_v1 = vsel %vm34_vm0, %v33_v0, 0.0  ;;  %v42_v2 = vmul.f32 %v33_v0, %v33_v0  ;;  %v51_v10 = vshrl.u32 %v50_v4, 7 }
   0x3   :  { %v36_v3 = vrot.slane %v35_v1, 4 }
   0x4   :  { %v43_v5 = vsel %vm34_vm0, %v42_v2, 0.0  ;;  %vm52_vm1 = vcmp.eq.s32.totalorder %v51_v10, 0 }
   0x5   :  { %v37_v6 = vadd.f32 %v36_v3, %v35_v1  ;;  %v44_v7 = vrot.slane %v43_v5, 4 }
   0x7   :  { %v38_v8 = vrot.slane %v37_v6, 2  ;;  %v45_v9 = vadd.f32 %v44_v7, %v43_v5 }
   0x9   :  { %v39_v11 = vadd.f32 %v38_v8, %v37_v6  ;;  %v46_v12 = vrot.slane %v45_v9, 2 }
   0xb   :  { %v40_v13 = vrot.slane %v39_v11, 1  ;;  %v47_v14 = vadd.f32 %v46_v12, %v45_v9 }
   0xd   :  { %v41_v15 = vadd.f32 %v40_v13, %v39_v11  ;;  %v48_v16 = vrot.slane %v47_v14, 1 }
   0xf   :  { %v53_v17 = vsel %vm52_vm1, %v41_v15, 0.0  ;;  %v49_v18 = vadd.f32 %v48_v16, %v47_v14 }
  0x10   :  { %57 = vst [vmem:[%s101_s1] sm:$0xff] %v53_v17 }
  0x11   :  { %v54_v19 = vsel %vm52_vm1, %v49_v18, 0.0 }
  0x12   :  { %60 = vst [vmem:[%s102_s2] sm:$0xff] %v54_v19 }

</bundles_post_ra>
